<compile_context>
chip_gen: v5e
topology: v5e:2x2
jax: 0.10.0
libtpu: 0.0.40
codegen_flags: <defaults>
</compile_context>

<pallas_src>
import jax
import jax.numpy as jnp
import numpy as np
from jax.experimental import pallas as pl
from jax.experimental.pallas import tpu as pltpu

HIDDEN = 16  # fc1/fc2 width, fixed by the PyTorch module


def _round_up(n: int, m: int) -> int:
    return ((n + m - 1) // m) * m


def make_apple_game_forward(board_size: int, action_size: int, tile_b: int = 512):
    """Returns a jitted forward(x, packed_params) implemented with a Pallas kernel."""
    A = action_size
    H = HIDDEN

    def kernel(x_ref, w1_ref, wr_ref, b_ref, out_ref):
        x = x_ref[...]
        b = b_ref[...]

        # fc1 + relu
        h1 = jnp.dot(x, w1_ref[...], preferred_element_type=jnp.float32) + b[:, 0:H]
        h1 = jnp.maximum(h1, 0.0)

        # fc2 + relu  (w2 is the first H columns of the packed weight)
        h2 = jnp.dot(h1, wr_ref[:, 0:H], preferred_element_type=jnp.float32) + b[:, H:2 * H]
        h2 = jnp.maximum(h2, 0.0)

        # fused action+value head: a single (H, A+1) matmul
        heads = (jnp.dot(h2, wr_ref[:, H:H + A + 1],
                         preferred_element_type=jnp.float32)
                 + b[:, 2 * H:2 * H + A + 1])

        # column mask: columns [0, A) are action logits, column A is the value logit
        col = jax.lax.broadcasted_iota(jnp.int32, heads.shape, 1)
        is_action = col < A

        # softmax over the action columns (numerically stable)
        m = jnp.max(jnp.where(is_action, heads, -jnp.inf), axis=1, keepdims=True)
        e = jnp.where(is_action, jnp.exp(heads - m), 0.0)
        denom = jnp.sum(e, axis=1, keepdims=True)
        pi_part = e * pl.reciprocal(denom, approx=False)

        # sigmoid * board_size for the value column (computed lane-parallel)
        v_part = pl.reciprocal(1.0 + jnp.exp(-heads), approx=False) * jnp.float32(board_size)

        # single lane-dense fused write: [softmax(pi) | value]
        out_ref[...] = jnp.where(is_action, pi_part, v_part)

    def forward(x, packed_params):
        w1, wr, b = packed_params
        B = x.shape[0]

        tb = min(tile_b, _round_up(B, 8))      # fp32 sublane multiple
        pB = _round_up(B, tb)
        if pB != B:
            x = jnp.pad(x, ((0, pB - B), (0, 0)))
        grid = (pB // tb,)

        flops = 2 * pB * (board_size * H + H * H + H * (A + 1))
        bytes_accessed = 4 * (pB * (board_size + A + 1) + w1.size + wr.size + b.size)
        cost = pl.CostEstimate(flops=flops,
                               transcendentals=pB * (A + 1),
                               bytes_accessed=bytes_accessed)

        out = pl.pallas_call(
            kernel,
            out_shape=jax.ShapeDtypeStruct((pB, A + 1), jnp.float32),
            grid=grid,
            in_specs=[
                pl.BlockSpec((tb, board_size), lambda i: (i, 0)),          # x (tiled)
                pl.BlockSpec((board_size, H), lambda i: (0, 0)),           # w1 (resident)
                pl.BlockSpec((H, H + A + 1), lambda i: (0, 0)),            # [w2|wa|wv]
                pl.BlockSpec((1, 2 * H + A + 1), lambda i: (0, 0)),        # [b1|b2|ba|bv]
            ],
            out_specs=pl.BlockSpec((tb, A + 1), lambda i: (i, 0)),
            compiler_params=pltpu.CompilerParams(
                dimension_semantics=("parallel",)),
            cost_estimate=cost,
        )(x, w1, wr, b)

        pi = out[:B, 0:A]
        v = out[:B, A:A + 1]
        return pi, v

    return jax.jit(forward)


def init_params(key, board_size: int, action_size: int):
    """Deterministic init mimicking PyTorch nn.Linear defaults
    (uniform in [-1/sqrt(fan_in), 1/sqrt(fan_in)]).
    Weights stored transposed: (in_features, out_features)."""
    def linear(key, fan_in, fan_out):
        kw, kb = jax.random.split(key)
        bound = 1.0 / np.sqrt(fan_in)
        w = jax.random.uniform(kw, (fan_in, fan_out), jnp.float32, -bound, bound)
        b = jax.random.uniform(kb, (1, fan_out), jnp.float32, -bound, bound)
        return w, b

    k1, k2, k3, k4 = jax.random.split(key, 4)
    w1, b1 = linear(k1, board_size, HIDDEN)       # fc1
    w2, b2 = linear(k2, HIDDEN, HIDDEN)           # fc2
    wa, ba = linear(k3, HIDDEN, action_size)      # action_head
    wv, bv = linear(k4, HIDDEN, 1)                # value_head
    return (w1, b1, w2, b2, wa, ba, wv, bv)


def pack_params(params):
    """Concatenate same-leading-dim weights / all biases to cut DMA count."""
    w1, b1, w2, b2, wa, ba, wv, bv = params
    wr = jnp.concatenate([w2, wa, wv], axis=1)        # (16, 16 + A + 1)
    b = jnp.concatenate([b1, b2, ba, bv], axis=1)     # (1, 16 + 16 + A + 1)
    return (w1, wr, b)


def reference_forward(x, params, board_size):
    """Plain-JAX reference of the PyTorch forward for correctness check."""
    w1, b1, w2, b2, wa, ba, wv, bv = params
    h1 = jnp.maximum(x @ w1 + b1, 0.0)
    h2 = jnp.maximum(h1 @ w2 + b2, 0.0)
    logits = h2 @ wa + ba
    pi = jax.nn.softmax(logits, axis=1)
    v = jax.nn.sigmoid(h2 @ wv + bv) * board_size
    return pi, v


if __name__ == "__main__":
    board_size = 16     # in_features of fc1 (flattened board length)
    action_size = 32
    batch = 8

    key = jax.random.PRNGKey(0)
    kx, kp = jax.random.split(key)

    x = jax.random.normal(kx, (batch, board_size), dtype=jnp.float32)
    params = init_params(kp, board_size, action_size)
    packed = pack_params(params)

    fwd = make_apple_game_forward(board_size, action_size)
    pi, v = fwd(x, packed)
    jax.block_until_ready((pi, v))

    pi_ref, v_ref = reference_forward(x, params, board_size)
    np.testing.assert_allclose(np.asarray(pi), np.asarray(pi_ref), rtol=1e-5, atol=1e-5)
    np.testing.assert_allclose(np.asarray(v), np.asarray(v_ref), rtol=1e-5, atol=1e-5)
    assert pi.shape == (batch, action_size) and v.shape == (batch, 1)

    print("KERNEL_OK")
</pallas_src>

<mosaic_0001>
module attributes {stable_mosaic.version = 11 : i64} {
  func.func @kernel(%arg0: i32, %arg1: memref<8x16xf32, #tpu.memory_space<vmem>>, %arg2: memref<16x16xf32, #tpu.memory_space<vmem>>, %arg3: memref<16x49xf32, #tpu.memory_space<vmem>>, %arg4: memref<1x65xf32, #tpu.memory_space<vmem>>, %arg5: memref<8x33xf32, #tpu.memory_space<vmem>>) attributes {dimension_semantics = [#tpu.dimension_semantics<parallel>], iteration_bounds = array<i64: 1>, scalar_prefetch = 0 : i64, scratch_operands = 0 : i64, tpu.core_type = #tpu.core_type<tc>, window_params = [{transform_indices = @transform_0, window_bounds = array<i64: 8, 16>}, {pipeline_mode = #tpu.pipeline_mode<synchronous>, transform_indices = @transform_1, window_bounds = array<i64: 16, 16>}, {pipeline_mode = #tpu.pipeline_mode<synchronous>, transform_indices = @transform_2, window_bounds = array<i64: 16, 49>}, {pipeline_mode = #tpu.pipeline_mode<synchronous>, transform_indices = @transform_3, window_bounds = array<i64: 1, 65>}, {transform_indices = @transform_4, window_bounds = array<i64: 8, 33>}]} {
    %c0 = arith.constant 0 : index
    %c0_0 = arith.constant 0 : index
    %0 = vector.load %arg1[%c0, %c0_0] : memref<8x16xf32, #tpu.memory_space<vmem>>, vector<8x16xf32>
    %c0_1 = arith.constant 0 : index
    %c0_2 = arith.constant 0 : index
    %1 = vector.load %arg4[%c0_1, %c0_2] : memref<1x65xf32, #tpu.memory_space<vmem>>, vector<1x65xf32>
    %c0_3 = arith.constant 0 : index
    %c0_4 = arith.constant 0 : index
    %2 = vector.load %arg2[%c0_3, %c0_4] : memref<16x16xf32, #tpu.memory_space<vmem>>, vector<16x16xf32>
    %cst = arith.constant dense<0.000000e+00> : vector<8x16xf32>
    %3 = tpu.matmul %0, %2, %cst {dimension_numbers = #tpu.dot_dimension_numbers<[1], [0], [0], [1], [0, 0, 1, 1], [], []>} : vector<8x16xf32>, vector<16x16xf32>, vector<8x16xf32> -> vector<8x16xf32>
    %4 = vector.extract_strided_slice %1 {offsets = [0, 0], sizes = [1, 16], strides = [1, 1]} : vector<1x65xf32> to vector<1x16xf32>
    %5 = vector.broadcast %4 : vector<1x16xf32> to vector<8x16xf32>
    %6 = arith.addf %3, %5 : vector<8x16xf32>
    %cst_5 = arith.constant 0.000000e+00 : f32
    %7 = vector.broadcast %cst_5 : f32 to vector<8x16xf32>
    %8 = arith.maximumf %6, %7 : vector<8x16xf32>
    %c0_6 = arith.constant 0 : index
    %c0_7 = arith.constant 0 : index
    %9 = vector.load %arg3[%c0_6, %c0_7] : memref<16x49xf32, #tpu.memory_space<vmem>>, vector<16x16xf32>
    %cst_8 = arith.constant dense<0.000000e+00> : vector<8x16xf32>
    %10 = tpu.matmul %8, %9, %cst_8 {dimension_numbers = #tpu.dot_dimension_numbers<[1], [0], [0], [1], [0, 0, 1, 1], [], []>} : vector<8x16xf32>, vector<16x16xf32>, vector<8x16xf32> -> vector<8x16xf32>
    %11 = vector.extract_strided_slice %1 {offsets = [0, 16], sizes = [1, 16], strides = [1, 1]} : vector<1x65xf32> to vector<1x16xf32>
    %12 = vector.broadcast %11 : vector<1x16xf32> to vector<8x16xf32>
    %13 = arith.addf %10, %12 : vector<8x16xf32>
    %cst_9 = arith.constant 0.000000e+00 : f32
    %14 = vector.broadcast %cst_9 : f32 to vector<8x16xf32>
    %15 = arith.maximumf %13, %14 : vector<8x16xf32>
    %c0_10 = arith.constant 0 : index
    %c16 = arith.constant 16 : index
    %16 = vector.load %arg3[%c0_10, %c16] : memref<16x49xf32, #tpu.memory_space<vmem>>, vector<16x33xf32>
    %cst_11 = arith.constant dense<0.000000e+00> : vector<8x33xf32>
    %17 = tpu.matmul %15, %16, %cst_11 {dimension_numbers = #tpu.dot_dimension_numbers<[1], [0], [0], [1], [0, 0, 1, 1], [], []>} : vector<8x16xf32>, vector<16x33xf32>, vector<8x33xf32> -> vector<8x33xf32>
    %18 = vector.extract_strided_slice %1 {offsets = [0, 32], sizes = [1, 33], strides = [1, 1]} : vector<1x65xf32> to vector<1x33xf32>
    %19 = vector.broadcast %18 : vector<1x33xf32> to vector<8x33xf32>
    %20 = arith.addf %17, %19 : vector<8x33xf32>
    %21 = tpu.iota {dimensions = array<i32: 1>} : vector<8x33xi32>
    %c32_i32 = arith.constant 32 : i32
    %22 = vector.broadcast %c32_i32 : i32 to vector<8x33xi32>
    %23 = arith.cmpi slt, %21, %22 : vector<8x33xi32>
    %cst_12 = arith.constant 0xFF800000 : f32
    %24 = vector.broadcast %cst_12 : f32 to vector<8x33xf32>
    %25 = arith.select %23, %20, %24 : vector<8x33xi1>, vector<8x33xf32>
    %cst_13 = arith.constant dense<0xFF800000> : vector<8xf32>
    %26 = vector.multi_reduction <maximumf>, %25, %cst_13 [1] : vector<8x33xf32> to vector<8xf32>
    %27 = vector.shape_cast %26 : vector<8xf32> to vector<8x1xf32>
    %28 = vector.broadcast %27 : vector<8x1xf32> to vector<8x33xf32>
    %29 = arith.subf %20, %28 : vector<8x33xf32>
    %30 = math.exp %29 : vector<8x33xf32>
    %cst_14 = arith.constant 0.000000e+00 : f32
    %31 = vector.broadcast %cst_14 : f32 to vector<8x33xf32>
    %32 = arith.select %23, %30, %31 : vector<8x33xi1>, vector<8x33xf32>
    %cst_15 = arith.constant dense<0.000000e+00> : vector<8xf32>
    %33 = vector.multi_reduction <add>, %32, %cst_15 [1] : vector<8x33xf32> to vector<8xf32>
    %34 = vector.shape_cast %33 : vector<8xf32> to vector<8x1xf32>
    %35 = tpu.reciprocal %34 : vector<8x1xf32> -> vector<8x1xf32>
    %36 = vector.broadcast %35 : vector<8x1xf32> to vector<8x33xf32>
    %37 = arith.mulf %32, %36 : vector<8x33xf32>
    %cst_16 = arith.constant 0.000000e+00 : f32
    %38 = vector.broadcast %cst_16 : f32 to vector<8x33xf32>
    %39 = arith.subf %38, %20 : vector<8x33xf32>
    %40 = math.exp %39 : vector<8x33xf32>
    %cst_17 = arith.constant 1.000000e+00 : f32
    %41 = vector.broadcast %cst_17 : f32 to vector<8x33xf32>
    %42 = arith.addf %41, %40 : vector<8x33xf32>
    %43 = tpu.reciprocal %42 : vector<8x33xf32> -> vector<8x33xf32>
    %cst_18 = arith.constant 1.600000e+01 : f32
    %44 = vector.broadcast %cst_18 : f32 to vector<8x33xf32>
    %45 = arith.mulf %43, %44 : vector<8x33xf32>
    %46 = arith.select %23, %37, %45 : vector<8x33xi1>, vector<8x33xf32>
    %c0_19 = arith.constant 0 : index
    %c0_20 = arith.constant 0 : index
    %47 = vector.load %arg5[%c0_19, %c0_20] : memref<8x33xf32, #tpu.memory_space<vmem>>, vector<8x33xf32>
    tpu.vector_store %arg5[%c0_19, %c0_20], %46 {strides = array<i32>} : memref<8x33xf32, #tpu.memory_space<vmem>>, vector<8x33xf32>,
    return
  }
  func.func @transform_0(%arg0: i32) -> (i32, i32) {
    %c0_i32 = arith.constant 0 : i32
    %c0_i32_0 = arith.constant 0 : i32
    return %arg0, %c0_i32 : i32, i32
  }
  func.func @transform_1(%arg0: i32) -> (i32, i32) {
    %c0_i32 = arith.constant 0 : i32
    %c0_i32_0 = arith.constant 0 : i32
    %c0_i32_1 = arith.constant 0 : i32
    return %c0_i32, %c0_i32_0 : i32, i32
  }
  func.func @transform_2(%arg0: i32) -> (i32, i32) {
    %c0_i32 = arith.constant 0 : i32
    %c0_i32_0 = arith.constant 0 : i32
    %c0_i32_1 = arith.constant 0 : i32
    return %c0_i32, %c0_i32_0 : i32, i32
  }
  func.func @transform_3(%arg0: i32) -> (i32, i32) {
    %c0_i32 = arith.constant 0 : i32
    %c0_i32_0 = arith.constant 0 : i32
    %c0_i32_1 = arith.constant 0 : i32
    return %c0_i32, %c0_i32_0 : i32, i32
  }
  func.func @transform_4(%arg0: i32) -> (i32, i32) {
    %c0_i32 = arith.constant 0 : i32
    %c0_i32_0 = arith.constant 0 : i32
    return %arg0, %c0_i32 : i32, i32
  }
}

</mosaic_0001>

<bundles_post_ra>
// kernel: forward.1
= control target key start
LH: loop header
LB: loop body
LE: loop exit
PB: predicated region body
PF: predicated region fallthrough
CT: control target
= control target key end

     0   :  { %9 = vsyncpa [#allocation3], 0  ;;  %s370_s0 = inlined_call_operand.hbm [shape: f32[8,16], index: 0, kind: input, shape index: {}]   ;;  %s371_s1 = inlined_call_operand.hbm [shape: f32[16,16], index: 1, kind: input, shape index: {}]   ;;  %s372_s2 = inlined_call_operand.hbm [shape: f32[16,49], index: 2, kind: input, shape index: {}]   ;;  %s373_s3 = inlined_call_operand.vmem [shape: f32[1,65], index: 3, kind: input, shape index: {}]   ;;  %s374_s4 = inlined_call_operand.vmem [shape: f32[8,33], index: 4, kind: output, shape index: {}]  }
   0x1   :  { %10 = vsyncpa [#allocation5], 0  ;;  %s26_s17 = sshll.u32 %s371_s1, 4  ;;  %s314_s18 = smov [#allocation4]   ;;  %s27_s17 = int_to_ptr.hbm [resolvable:$true] %s26_s17 }
   0x2   :  { %s28_s19 = sshll.u32 %s314_s18, 4  ;;  %s16_s22 = sshll.u32 %s370_s0, 4  ;;  %s29_s19 = int_to_ptr.vmem [resolvable:$true] %s28_s19  ;;  %s17_s22 = int_to_ptr.hbm [resolvable:$true] %s16_s22 }
   0x3   :  { %s315_s23 = smov 128   ;;  %s316_s24 = smov 8  }
   0x4   :  { %34 = dma.hbm_to_vmem [thread:$0]  %s27_s17, 256, %s29_s19, [#allocation5], %s315_s23, %s315_s23, %s316_s24  }
   0x5   :  { %s317_s25 = smov [#allocation2]   ;;  %s39_s29 = sshll.u32 %s372_s2, 4  ;;  %s40_s29 = int_to_ptr.hbm [resolvable:$true] %s39_s29 }
   0x6   :  { %s18_s26 = sshll.u32 %s317_s25, 4  ;;  %s318_s1 = smov [#allocation6]   ;;  %s19_s26 = int_to_ptr.vmem [resolvable:$true] %s18_s26 }
   0x7   :  { %21 = dma.hbm_to_vmem [thread:$0]  %s17_s22, 128, %s19_s26, [#allocation3]  }
   0x8   :  { %s41_s30 = sshll.u32 %s318_s1, 4  ;;  %s42_s30 = int_to_ptr.vmem [resolvable:$true] %s41_s30 }
   0x9   :  { %47 = dma.hbm_to_vmem [thread:$0]  %s40_s29, 256, %s42_s30, [#allocation5], %s315_s23, %s315_s23, %s316_s24  }
   0xa   :  { %310 = dma.done.wait [#allocation3], 128  }
   0xb   :  { %311 = vsyncadd [#allocation3], 4294967168 }
   0xc   :  { %312 = dma.done.wait [#allocation5], 512  }
   0xd   :  { %313 = vsyncadd [#allocation5], 4294966784  ;;  %v65_v0 = vld [vmem:[#allocation4 + $0x8] sm:$0xff]  ;;  %v64_v1 = vld [vmem:[#allocation4] sm:$0xff]  ;;  %vm69_vm0 = vcmask 130048   ;;  %s319_s2 = smov 112   ;;  %v157_v17 = vlaneseq }
   0xe   :  { %87 = vmatpush.msra.mxu0 %v65_v0  ;;  %v62_v2 = vld [vmem:[#allocation2] sm:$0xff]  ;;  %v94_v5 = vld [vmem:[#allocation6] sm:$0xff]  ;;  %s320_s6 = smov 96   ;;  %vm161_vm2 = vcmask 269312  }
   0xf   :  { %v229_v3 = vld [vmem:[%s373_s3] ss:$0 sm:$0xff]  ;;  %v158_v18 = vand.u32 127, %v157_v17 }
  0x10   :  { %88 = vmatpush.msra.mxu0 %v64_v1  ;;  %96 = vrot.lane.b32.xlu0 %v229_v3, %s319_s2  ;;  %v95_v4 = vld [vmem:[#allocation6 + $0x8] sm:$0xff] }
  0x11   :  { %214 = vmatmul.msk.f32.vlgmr.msra.gmra.mxu0 %vm69_vm0, %v62_v2  ;;  %116 = vmatpush.msra.mxu1 %v95_v4  ;;  %v224_v6 = vpack.i.bf16 %v94_v5, %v95_v4  ;;  %vm159_vm1 = vcmp.lt.s32.totalorder %v158_v18, 32 }
  0x12   :  { %131 = vrot.lane.b32.xlu1 %v229_v3, %s320_s6 }
  0x13   :  { %117 = vmatpush.msra.mxu1 %v94_v5 }
  0x18   :  { %225 = vrot.lane.b32.xlu0 %v224_v6, %s319_s2 }
  0x82   :  { %v97_v10 = vpop.permute.xlu0 %96 }
  0x84   :  { %v132_v19 = vpop.permute.xlu1 %131 }
  0x8a   :  { %v226_v11 = vpop.permute.xlu0 %225 }
  0x8b   :  { %v228_v12 = vunpack.i.h.bf16 %v226_v11  ;;  %v227_v13 = vunpack.i.l.bf16 %v226_v11 }
  0x8d   :  { %151 = vmatpush.msra.mxu2 %v227_v13 }
  0x8e   :  { %v90_v7 = vpop.f32.mrf.mxu0 }
  0x8f   :  { %v91_v8 = vadd.f32 %v229_v3, %v90_v7  ;;  %152 = vmatpush.msra.mxu2 %v228_v12 }
  0x91   :  { %v93_v9 = vmax.f32 %v91_v8, 0.0 }
  0x93   :  { %215 = vmatmul.msk.f32.vlgmr.msra.gmra.mxu1 %vm69_vm0, %v93_v9 }
 0x110   :  { %v119_v14 = vpop.f32.mrf.mxu1 }
 0x111   :  { %v120_v15 = vadd.f32 %v119_v14, %v97_v10 }
 0x113   :  { %v122_v16 = vmax.f32 %v120_v15, 0.0 }
 0x115   :  { %216 = vmatmul.msk.f32.vlgmr.msra.gmra.mxu2 %vm69_vm0, %v122_v16 }
 0x198   :  { %v154_v20 = vpop.f32.mrf.mxu2 }
 0x199   :  { %v155_v21 = vadd.f32 %v154_v20, %v132_v19 }
 0x19b   :  { %v160_v22 = vsel %vm159_vm1, %v155_v21, -inf  ;;  %v187_v30 = vsub.f32 0.0, %v155_v21 }
 0x19c   :  { %v162_v23 = vsel %vm161_vm2, %v160_v22, -inf }
 0x19d   :  { %163 = vmax.xlane.f32.xlu1 %v162_v23  ;;  %v188_v31 = vmul.f32 1.442695, %v187_v30 }
 0x210   :  { %v164_v24 = vpop.xlane.xlu1 %163 }
 0x211   :  { %v165_v25 = vsub.f32 %v155_v21, %v164_v24 }
 0x213   :  { %v166_v26 = vmul.f32 1.442695, %v165_v25 }
 0x215   :  { %230 = vpow2.f32 %v166_v26 }
 0x216   :  { %232 = vpow2.f32 %v188_v31 }
 0x21b   :  { %v231_v27 = vpop.eup %230 }
 0x21c   :  { %v168_v28 = vsel %vm159_vm1, %v231_v27, 0.0  ;;  %v233_v32 = vpop.eup %232 }
 0x21d   :  { %v169_v29 = vsel %vm161_vm2, %v168_v28, 0.0  ;;  %v190_v33 = vadd.f32 1.0, %v233_v32 }
 0x21e   :  { %170 = vadd.xlane.f32.xlu2 %v169_v29 }
 0x21f   :  { %234 = vrcp.f32 %v190_v33  ;;  %v202_v42 = vand.u32 2147483648, %v190_v33  ;;  %vm196_vm4 = vweird.f32 %v190_v33  ;;  %v200_v43 = vand.u32 2147483647, %v190_v33 }
 0x221   :  { %v203_v49 = vor.u32 1.1754944e-38, %v202_v42  ;;  %vm201_vm7 = vcmp.eq.f32.partialorder %v200_v43, 8.507059e+37 }
 0x225   :  { %v235_v34 = vpop.eup %234 }
 0x226   :  { %v192_v35 = vmul.f32 %v235_v34, %v190_v33  ;;  %vm197_vm3 = vweird.f32 %v235_v34 }
 0x227   :  { %vm198_vm5 = vmor %vm196_vm4, %vm197_vm3 }
 0x228   :  { %v193_v36 = vsub.f32 1.0, %v192_v35 }
 0x22a   :  { %v194_v38 = vmul.f32 %v235_v34, %v193_v36 }
 0x22c   :  { %v195_v40 = vadd.f32 %v235_v34, %v194_v38 }
 0x22e   :  { %v199_v46 = vsel %vm198_vm5, %v235_v34, %v195_v40 }
 0x22f   :  { %v204_v51 = vsel %vm201_vm7, %v203_v49, %v199_v46 }
 0x230   :  { %v205_v55 = vmul.f32 16.0, %v204_v51 }
 0x291   :  { %v171_v37 = vpop.xlane.xlu2 %170 }
 0x292   :  { %236 = vrcp.f32 %v171_v37  ;;  %v183_v45 = vand.u32 2147483648, %v171_v37  ;;  %v181_v48 = vand.u32 2147483647, %v171_v37  ;;  %vm177_vm8 = vweird.f32 %v171_v37 }
 0x294   :  { %v184_v52 = vor.u32 1.1754944e-38, %v183_v45  ;;  %vm182_vm10 = vcmp.eq.f32.partialorder %v181_v48, 8.507059e+37 }
 0x298   :  { %v237_v39 = vpop.eup %236 }
 0x299   :  { %v173_v41 = vmul.f32 %v237_v39, %v171_v37  ;;  %vm178_vm6 = vweird.f32 %v237_v39 }
 0x29a   :  { %vm179_vm9 = vmor %vm177_vm8, %vm178_vm6 }
 0x29b   :  { %v174_v44 = vsub.f32 1.0, %v173_v41 }
 0x29d   :  { %v175_v47 = vmul.f32 %v237_v39, %v174_v44 }
 0x29f   :  { %v176_v50 = vadd.f32 %v237_v39, %v175_v47 }
 0x2a1   :  { %v180_v53 = vsel %vm179_vm9, %v237_v39, %v176_v50 }
 0x2a2   :  { %v185_v54 = vsel %vm182_vm10, %v184_v52, %v180_v53 }
 0x2a3   :  { %v186_v56 = vmul.f32 %v185_v54, %v168_v28 }
 0x2a5   :  { %v206_v57 = vsel %vm159_vm1, %v186_v56, %v205_v55 }
 0x2a6   :  { %207 = vst.msk [vmem:[%s374_s4] sm:$0xff] %vm161_vm2, %v206_v57 }
 0x2a7   :  { %212 = vsyncpa [#allocation3], 1 }
 0x2a8   :  { %213 = vsyncpa [#allocation5], 1 }

</bundles_post_ra>
